<compile_context>
chip_gen: v7x
topology: tpu7x:2x2x1
jax: 0.10.0
libtpu: 0.0.40
codegen_flags: <defaults>
</compile_context>

<pallas_src>
import jax
import jax.numpy as jnp
from jax.experimental import pallas as pl
from jax.experimental.pallas import tpu as pltpu

LANE = 128  # lanes per vreg row


def _ensemble_kernel(x1_ref, x2_ref, seg_ref, w1_ref, w2_ref, b_ref, o_ref):
    """One (tile, 128) packed batch tile -> (tile, pack*out_dim) packed output."""
    x1 = x1_ref[...].astype(jnp.float32)   # (tile, 128): 8 batch rows per row
    x2 = x2_ref[...].astype(jnp.float32)
    seg = seg_ref[...]                     # (128, 128) block-diagonal ones

    # Exact softmax shift: the per-packed-row max is one constant per 16-lane
    # group, so the softmax value is unchanged; only overflow headroom is
    # shared across the 8 batch rows packed into a vreg row.
    e1 = jnp.exp(x1 - jnp.max(x1, axis=-1, keepdims=True))
    e2 = jnp.exp(x2 - jnp.max(x2, axis=-1, keepdims=True))

    # Segmented (per 16-lane group) sums, broadcast back across each group via
    # a single MXU matmul -- avoids any lane relayout for the reduction.
    s1 = jnp.dot(e1, seg, preferred_element_type=jnp.float32)
    s2 = jnp.dot(e2, seg, preferred_element_type=jnp.float32)
    p1 = e1 / s1                           # exact divide (no approx reciprocal)
    p2 = e2 / s2

    # Packed linear: block-diagonal weights place each batch row's out_dim
    # outputs into its own 8-lane group of the packed output row.
    out = jnp.dot(p1, w1_ref[...], preferred_element_type=jnp.float32)
    out = out + jnp.dot(p2, w2_ref[...], preferred_element_type=jnp.float32)
    out = out + b_ref[...]                 # (1, pack*out_dim) broadcasts
    o_ref[...] = out.astype(o_ref.dtype)


def prepare_params(weight, bias, d1, d2):
    """One-time prep of PyTorch-layout fc1 params into packed form.

    weight: (out_dim, d1+d2), bias: (out_dim,)   [torch nn.Linear layout]
    Returns (seg, w1p, w2p, bp, meta) -- all done once, never per call.
    """
    out_dim = weight.shape[0]
    assert weight.shape[1] == d1 + d2
    # Lane packing assumes both logit widths are equal and divide 128 lanes.
    assert d1 == d2 and LANE % d1 == 0, "packed kernel assumes d1 == d2 and d1 | 128"
    pack = LANE // d1                                   # batch rows per vreg row

    w_t = jnp.asarray(weight, jnp.float32).T            # (d1+d2, out_dim)
    w1 = w_t[:d1, :]                                    # (d1, out_dim)
    w2 = w_t[d1:, :]                                    # (d2, out_dim)
    eye = jnp.eye(pack, dtype=jnp.float32)
    w1p = jnp.kron(eye, w1)                             # (128, pack*out_dim) block-diag
    w2p = jnp.kron(eye, w2)                             # (128, pack*out_dim) block-diag
    seg = jnp.kron(eye, jnp.ones((d1, d1), jnp.float32))  # (128, 128) group-sum bcast
    bp = jnp.tile(jnp.asarray(bias, jnp.float32), pack).reshape(1, pack * out_dim)
    meta = (d1, d2, out_dim, pack)
    return seg, w1p, w2p, bp, meta


def ensemble_forward(x1_logits, x2_logits, params, *, max_tile_rows=512):
    """Forward pass.  params = prepare_params(weight, bias, d1, d2).

    max_tile_rows is in *packed* rows (1 packed row = `pack` batch rows), so
    the default 512 packed rows = 4096 batch rows per grid step.
    """
    seg, w1p, w2p, bp, (d1, d2, out_dim, pack) = params
    B = x1_logits.shape[0]
    assert x1_logits.shape[1] == d1 and x2_logits.shape[1] == d2
    assert x2_logits.shape[0] == B

    out_lane = pack * out_dim
    n_rows = -(-B // pack)                      # packed rows needed

    # Tile (in packed rows): multiple of 8 sublanes; when there's enough work,
    # keep >= 2 grid steps so both v7x TensorCores get a share of the
    # "parallel" batch axis (harmless on single-TC v5e/v6e).
    tile = min(max_tile_rows, n_rows)
    if n_rows >= 16:
        tile = min(tile, n_rows // 2)
    tile = max(8, (tile // 8) * 8)
    n_pad = -(-n_rows // tile) * tile           # padded packed rows
    b_pad = n_pad * pack                        # padded batch rows

    if b_pad != B:                              # zero-pad the tail tile
        x1_logits = jnp.pad(x1_logits, ((0, b_pad - B), (0, 0)))
        x2_logits = jnp.pad(x2_logits, ((0, b_pad - B), (0, 0)))

    # Free row-major reshapes: `pack` consecutive batch rows per 128-lane row.
    x1p = x1_logits.reshape(n_pad, LANE)
    x2p = x2_logits.reshape(n_pad, LANE)

    out_packed = pl.pallas_call(
        _ensemble_kernel,
        out_shape=jax.ShapeDtypeStruct((n_pad, out_lane), jnp.float32),
        grid=(n_pad // tile,),
        in_specs=[
            pl.BlockSpec((tile, LANE), lambda i: (i, 0)),       # x1: streamed
            pl.BlockSpec((tile, LANE), lambda i: (i, 0)),       # x2: streamed
            pl.BlockSpec((LANE, LANE), lambda i: (0, 0)),       # seg: resident
            pl.BlockSpec((LANE, out_lane), lambda i: (0, 0)),   # w1p: resident
            pl.BlockSpec((LANE, out_lane), lambda i: (0, 0)),   # w2p: resident
            pl.BlockSpec((1, out_lane), lambda i: (0, 0)),      # bias: resident
        ],
        out_specs=pl.BlockSpec((tile, out_lane), lambda i: (i, 0)),
        compiler_params=pltpu.CompilerParams(
            dimension_semantics=("parallel",),       # shard grid on v7x 2xTC
            vmem_limit_bytes=32 * 1024 * 1024,       # safe on v5e/v6e/v7x scoped limits
        ),
    )(x1p, x2p, seg, w1p, w2p, bp)

    # Free reshape back to (B, out_dim); drop any zero-padded rows.
    return out_packed.reshape(b_pad, out_dim)[:B]


def _reference(x1, x2, weight, bias):
    p1 = jax.nn.softmax(x1, axis=1)
    p2 = jax.nn.softmax(x2, axis=1)
    combined = jnp.concatenate([p1, p2], axis=1)
    return combined @ weight.T + bias


if __name__ == "__main__":
    key = jax.random.PRNGKey(0)
    k1, k2, kw, kb = jax.random.split(key, 4)

    B = 256
    module1_dim = 16
    module2_dim = 16
    output_dim = 8

    x1_logits = jax.random.normal(k1, (B, module1_dim), dtype=jnp.float32)
    x2_logits = jax.random.normal(k2, (B, module2_dim), dtype=jnp.float32)

    # Deterministic fc1 params (PyTorch layout: weight (out, in), bias (out,)).
    in_dim = module1_dim + module2_dim
    bound = 1.0 / jnp.sqrt(in_dim)
    weight = jax.random.uniform(
        kw, (output_dim, in_dim), minval=-bound, maxval=bound, dtype=jnp.float32
    )
    bias = jax.random.uniform(
        kb, (output_dim,), minval=-bound, maxval=bound, dtype=jnp.float32
    )

    # One-time parameter prep (transpose + block-diag packing), then the kernel.
    params = prepare_params(weight, bias, module1_dim, module2_dim)
    out = ensemble_forward(x1_logits, x2_logits, params)   # grid=(2,) here
    jax.block_until_ready(out)

    ref = _reference(x1_logits, x2_logits, weight, bias)
    assert out.shape == (B, output_dim)
    # Exact softmax (exact divide); remaining error is MXU f32 rounding only.
    assert jnp.allclose(out, ref, atol=1e-3, rtol=1e-3), "mismatch vs reference"

    print("KERNEL_OK")
</pallas_src>

<mosaic_0001>
module attributes {stable_mosaic.version = 11 : i64} {
  func.func @_ensemble_kernel(%arg0: i32, %arg1: memref<16x128xf32, #tpu.memory_space<vmem>>, %arg2: memref<16x128xf32, #tpu.memory_space<vmem>>, %arg3: memref<128x128xf32, #tpu.memory_space<vmem>>, %arg4: memref<128x64xf32, #tpu.memory_space<vmem>>, %arg5: memref<128x64xf32, #tpu.memory_space<vmem>>, %arg6: memref<1x64xf32, #tpu.memory_space<vmem>>, %arg7: memref<16x64xf32, #tpu.memory_space<vmem>>) attributes {dimension_semantics = [#tpu.dimension_semantics<parallel>], iteration_bounds = array<i64: 2>, scalar_prefetch = 0 : i64, scratch_operands = 0 : i64, tpu.core_type = #tpu.core_type<tc>, window_params = [{transform_indices = @transform_0, window_bounds = array<i64: 16, 128>}, {transform_indices = @transform_1, window_bounds = array<i64: 16, 128>}, {pipeline_mode = #tpu.pipeline_mode<synchronous>, transform_indices = @transform_2, window_bounds = array<i64: 128, 128>}, {pipeline_mode = #tpu.pipeline_mode<synchronous>, transform_indices = @transform_3, window_bounds = array<i64: 128, 64>}, {pipeline_mode = #tpu.pipeline_mode<synchronous>, transform_indices = @transform_4, window_bounds = array<i64: 128, 64>}, {pipeline_mode = #tpu.pipeline_mode<synchronous>, transform_indices = @transform_5, window_bounds = array<i64: 1, 64>}, {transform_indices = @transform_6, window_bounds = array<i64: 16, 64>}]} {
    %c0 = arith.constant 0 : index
    %c0_0 = arith.constant 0 : index
    %0 = vector.load %arg1[%c0, %c0_0] : memref<16x128xf32, #tpu.memory_space<vmem>>, vector<16x128xf32>
    %c0_1 = arith.constant 0 : index
    %c0_2 = arith.constant 0 : index
    %1 = vector.load %arg2[%c0_1, %c0_2] : memref<16x128xf32, #tpu.memory_space<vmem>>, vector<16x128xf32>
    %c0_3 = arith.constant 0 : index
    %c0_4 = arith.constant 0 : index
    %2 = vector.load %arg3[%c0_3, %c0_4] : memref<128x128xf32, #tpu.memory_space<vmem>>, vector<128x128xf32>
    %cst = arith.constant dense<0xFF800000> : vector<16xf32>
    %3 = vector.multi_reduction <maximumf>, %0, %cst [1] : vector<16x128xf32> to vector<16xf32>
    %4 = vector.shape_cast %3 : vector<16xf32> to vector<16x1xf32>
    %5 = vector.broadcast %4 : vector<16x1xf32> to vector<16x128xf32>
    %6 = arith.subf %0, %5 : vector<16x128xf32>
    %7 = math.exp %6 : vector<16x128xf32>
    %cst_5 = arith.constant dense<0xFF800000> : vector<16xf32>
    %8 = vector.multi_reduction <maximumf>, %1, %cst_5 [1] : vector<16x128xf32> to vector<16xf32>
    %9 = vector.shape_cast %8 : vector<16xf32> to vector<16x1xf32>
    %10 = vector.broadcast %9 : vector<16x1xf32> to vector<16x128xf32>
    %11 = arith.subf %1, %10 : vector<16x128xf32>
    %12 = math.exp %11 : vector<16x128xf32>
    %cst_6 = arith.constant dense<0.000000e+00> : vector<16x128xf32>
    %13 = tpu.matmul %7, %2, %cst_6 {dimension_numbers = #tpu.dot_dimension_numbers<[1], [0], [0], [1], [0, 0, 1, 1], [], []>} : vector<16x128xf32>, vector<128x128xf32>, vector<16x128xf32> -> vector<16x128xf32>
    %cst_7 = arith.constant dense<0.000000e+00> : vector<16x128xf32>
    %14 = tpu.matmul %12, %2, %cst_7 {dimension_numbers = #tpu.dot_dimension_numbers<[1], [0], [0], [1], [0, 0, 1, 1], [], []>} : vector<16x128xf32>, vector<128x128xf32>, vector<16x128xf32> -> vector<16x128xf32>
    %15 = arith.divf %7, %13 : vector<16x128xf32>
    %16 = arith.divf %12, %14 : vector<16x128xf32>
    %c0_8 = arith.constant 0 : index
    %c0_9 = arith.constant 0 : index
    %17 = vector.load %arg4[%c0_8, %c0_9] : memref<128x64xf32, #tpu.memory_space<vmem>>, vector<128x64xf32>
    %cst_10 = arith.constant dense<0.000000e+00> : vector<16x64xf32>
    %18 = tpu.matmul %15, %17, %cst_10 {dimension_numbers = #tpu.dot_dimension_numbers<[1], [0], [0], [1], [0, 0, 1, 1], [], []>} : vector<16x128xf32>, vector<128x64xf32>, vector<16x64xf32> -> vector<16x64xf32>
    %c0_11 = arith.constant 0 : index
    %c0_12 = arith.constant 0 : index
    %19 = vector.load %arg5[%c0_11, %c0_12] : memref<128x64xf32, #tpu.memory_space<vmem>>, vector<128x64xf32>
    %cst_13 = arith.constant dense<0.000000e+00> : vector<16x64xf32>
    %20 = tpu.matmul %16, %19, %cst_13 {dimension_numbers = #tpu.dot_dimension_numbers<[1], [0], [0], [1], [0, 0, 1, 1], [], []>} : vector<16x128xf32>, vector<128x64xf32>, vector<16x64xf32> -> vector<16x64xf32>
    %21 = arith.addf %18, %20 : vector<16x64xf32>
    %c0_14 = arith.constant 0 : index
    %c0_15 = arith.constant 0 : index
    %22 = vector.load %arg6[%c0_14, %c0_15] : memref<1x64xf32, #tpu.memory_space<vmem>>, vector<1x64xf32>
    %23 = vector.broadcast %22 : vector<1x64xf32> to vector<16x64xf32>
    %24 = arith.addf %21, %23 : vector<16x64xf32>
    %c0_16 = arith.constant 0 : index
    %c0_17 = arith.constant 0 : index
    %25 = vector.load %arg7[%c0_16, %c0_17] : memref<16x64xf32, #tpu.memory_space<vmem>>, vector<16x64xf32>
    tpu.vector_store %arg7[%c0_16, %c0_17], %24 {strides = array<i32>} : memref<16x64xf32, #tpu.memory_space<vmem>>, vector<16x64xf32>,
    return
  }
  func.func @transform_0(%arg0: i32) -> (i32, i32) {
    %c0_i32 = arith.constant 0 : i32
    %c0_i32_0 = arith.constant 0 : i32
    return %arg0, %c0_i32 : i32, i32
  }
  func.func @transform_1(%arg0: i32) -> (i32, i32) {
    %c0_i32 = arith.constant 0 : i32
    %c0_i32_0 = arith.constant 0 : i32
    return %arg0, %c0_i32 : i32, i32
  }
  func.func @transform_2(%arg0: i32) -> (i32, i32) {
    %c0_i32 = arith.constant 0 : i32
    %c0_i32_0 = arith.constant 0 : i32
    %c0_i32_1 = arith.constant 0 : i32
    return %c0_i32, %c0_i32_0 : i32, i32
  }
  func.func @transform_3(%arg0: i32) -> (i32, i32) {
    %c0_i32 = arith.constant 0 : i32
    %c0_i32_0 = arith.constant 0 : i32
    %c0_i32_1 = arith.constant 0 : i32
    return %c0_i32, %c0_i32_0 : i32, i32
  }
  func.func @transform_4(%arg0: i32) -> (i32, i32) {
    %c0_i32 = arith.constant 0 : i32
    %c0_i32_0 = arith.constant 0 : i32
    %c0_i32_1 = arith.constant 0 : i32
    return %c0_i32, %c0_i32_0 : i32, i32
  }
  func.func @transform_5(%arg0: i32) -> (i32, i32) {
    %c0_i32 = arith.constant 0 : i32
    %c0_i32_0 = arith.constant 0 : i32
    %c0_i32_1 = arith.constant 0 : i32
    return %c0_i32, %c0_i32_0 : i32, i32
  }
  func.func @transform_6(%arg0: i32) -> (i32, i32) {
    %c0_i32 = arith.constant 0 : i32
    %c0_i32_0 = arith.constant 0 : i32
    return %arg0, %c0_i32 : i32, i32
  }
}

</mosaic_0001>

<bundles_post_ra>
// kernel: tpu_custom_call.1
= control target key start
LH: loop header
LB: loop body
LE: loop exit
PB: predicated region body
PF: predicated region fallthrough
CT: control target
= control target key end

     0   :  { %11 = vsyncpa [#allocation3], 0  ;;  %s1548_s0 = inlined_call_operand.vmem [shape: f32[32,128], index: 0, kind: input, shape index: {}]   ;;  %s1549_s1 = inlined_call_operand.vmem [shape: f32[32,128], index: 1, kind: input, shape index: {}]   ;;  %s1550_s2 = inlined_call_operand.vmem [shape: f32[128,128], index: 2, kind: input, shape index: {}]   ;;  %s1551_s3 = inlined_call_operand.vmem [shape: f32[128,64], index: 3, kind: input, shape index: {}]   ;;  %s1552_s4 = inlined_call_operand.vmem [shape: f32[128,64], index: 4, kind: input, shape index: {}]   ;;  %s1553_s5 = inlined_call_operand.vmem [shape: f32[1,64], index: 5, kind: input, shape index: {}]   ;;  %s1554_s6 = inlined_call_operand.hbm [shape: f32[32,64], index: 6, kind: output, shape index: {}]  }
   0x1   :  { %13 = vsyncpa [#allocation3 + $0x1], 0  ;;  %s1272_s21 = smov 0   ;;  %s1274_s22 = smov 0  }
   0x2   :  { %s1276_s23 = smov 0   ;;  %s1278_s24 = smov 0  }
   0x3 LB: > { %s1293_s25 = sadd.s32 4294967295, %s1232_s24   ;;  %s755_s26 = sadd.s32 4294967294, %s1232_s24   ;;  %s1232_s24 = sphi %s1278_s24, %s1560_s24   ;;  %s1228_s23 = sphi %s1276_s23, %s1559_s23   ;;  %s1224_s22 = sphi %s1274_s22, %s1558_s22   ;;  %s1220_s21 = sphi %s1272_s21, %s1557_s21  }
   0x4   : > { %s1297_s27 = sadd.s32 1, %s1232_s24   ;;  %s162_s28 = sadd.s32 1, %s1228_s23 }
   0x5   : > { %s159_s29 = ssub.s32 %s1232_s24, %s1297_s27  ;;  %p172_p0 = scmp.ne.s32.totalorder %s1228_s23, %s1224_s22 }
   0x6   : > { %p160_p1 = scmp.eq.s32.totalorder %s159_s29, 0  ;;  %p173_p2 = scmp.eq.s32.totalorder %s1293_s25, 1 }
   0x7   : > { %p178_p3 = scmp.ne.s32.totalorder %s1224_s22, %s1220_s21  ;;  %p179_p4 = scmp.eq.s32.totalorder %s755_s26, 1 }
   0x8   : > { %s1308_s30 = scalar_select %p160_p1, %s1228_s23, %s162_s28  }
   0x9   : > { %p1310_p5 = por %p173_p2, %p172_p0  ;;  %p1314_p6 = por %p179_p4, %p178_p3 }
   0xa   : > { %p758_p7 = scmp.ge.s32.totalorder %s1232_s24, 1  ;;  %p227_p8 = scmp.lt.s32.totalorder %s1232_s24, 3 }
   0xc   : > { %p228_p9 = pnand %p758_p7, %p227_p8 }
   0xd   : > { %s760_s9 = sshll.u32 (!%p228_p9), %s1293_s25, 1  ;;  %v279_v0 = vld [vmem:[%s1550_s2] sm:$0xff] (!%p228_p9)  ;;  %v280_v1 = vld [vmem:[%s1550_s2 + $0x8] sm:$0xff] (!%p228_p9)  ;;  %v281_v2 = vld [vmem:[%s1550_s2 + $0x10] sm:$0xff] (!%p228_p9)  ;;  %s259_s29 = sand.u32 (!%p228_p9), 1, %s1224_s22   ;;  %vm664_vm0 = vcmask (!%p228_p9), 523264  }
   0xe   : > { %231 = sbr.rel (%p228_p9) target bundleno = 707 (0x2c3), region = 44  ;;  %p263_p10 = scmp.lt.s32.totalorder (!%p228_p9), %s760_s9, 3  ;;  %v1330_v3 = vpack.c.bf16 (!%p228_p9), %v280_v1, %v279_v0  ;;  %v282_v4 = vld [vmem:[%s1550_s2 + $0x18] sm:$0xff] (!%p228_p9)  ;;  %v283_v6 = vld [vmem:[%s1550_s2 + $0x20] sm:$0xff] (!%p228_p9)  ;;  %v284_v7 = vld [vmem:[%s1550_s2 + $0x28] sm:$0xff] (!%p228_p9) }
   0xf   : > { %v1335_v5 = vpack.c.bf16 (!%p228_p9), %v282_v4, %v281_v2  ;;  %v991_v8 = vpack.c.bf16 (!%p228_p9), %v284_v7, %v283_v6  ;;  %v285_v9 = vld [vmem:[%s1550_s2 + $0x30] sm:$0xff] (!%p228_p9)  ;;  %v286_v12 = vld [vmem:[%s1550_s2 + $0x38] sm:$0xff] (!%p228_p9)  ;;  %v287_v16 = vld [vmem:[%s1550_s2 + $0x40] sm:$0xff] (!%p228_p9)  ;;  %s759_s10 = sshll.u32 (!%p228_p9), %s259_s29, 4  ;;  %s770_s15 = sshll.u32 (!%p228_p9), %s1293_s25, 8 }
  0x10   : > { %984 = vmatprep.subr.bf16.mxu1 (!%p228_p9), %v1330_v3  ;;  %v995_v15 = vpack.c.bf16 (!%p228_p9), %v286_v12, %v285_v9  ;;  %v288_v17 = vld [vmem:[%s1550_s2 + $0x48] sm:$0xff] (!%p228_p9)  ;;  %v289_v19 = vld [vmem:[%s1550_s2 + $0x50] sm:$0xff] (!%p228_p9)  ;;  %v290_v20 = vld [vmem:[%s1550_s2 + $0x58] sm:$0xff] (!%p228_p9)  ;;  %s261_s13 = scalar_lea.vmem (!%p228_p9), [#allocation2], %s759_s10  ;;  %s1505_s18 = scalar_lea.hbm (!%p228_p9), %s1554_s6, %s770_s15 }
  0x11   : > { %986 = vmatpush3.bf16.msra.mxu1 (!%p228_p9), %v1330_v3  ;;  %v999_v18 = vpack.c.bf16 (!%p228_p9), %v288_v17, %v287_v16  ;;  %v1003_v21 = vpack.c.bf16 (!%p228_p9), %v290_v20, %v289_v19  ;;  %v291_v22 = vld [vmem:[%s1550_s2 + $0x60] sm:$0xff] (!%p228_p9)  ;;  %v292_v23 = vld [vmem:[%s1550_s2 + $0x68] sm:$0xff] (!%p228_p9)  ;;  %v293_v25 = vld [vmem:[%s1550_s2 + $0x70] sm:$0xff] (!%p228_p9)  ;;  %s1234_s19 = smov (!%p228_p9), [#allocation2]  }
  0x12   : > { %988 = vmatprep.subr.bf16.mxu1 (!%p228_p9), %v1335_v5  ;;  %v1007_v24 = vpack.c.bf16 (!%p228_p9), %v292_v23, %v291_v22  ;;  %v294_v26 = vld [vmem:[%s1550_s2 + $0x78] sm:$0xff] (!%p228_p9)  ;;  %v489_v44 = vld [vmem:[%s1552_s4] sm:$0xff] (!%p228_p9)  ;;  %v490_v45 = vld [vmem:[%s1552_s4 + $0x8] sm:$0xff] (!%p228_p9)  ;;  %s1174_s20 = sshll.u32 (!%p228_p9), %s1234_s19, 4  ;;  %s1175_s20 = int_to_ptr.vmem [resolvable:$false] %s1174_s20 }
  0x13   : > { %v1011_v27 = vpack.c.bf16 (!%p228_p9), %v294_v26, %v293_v25  ;;  %v491_v46 = vld [vmem:[%s1552_s4 + $0x10] sm:$0xff] (!%p228_p9)  ;;  %v1047_v47 = vpack.c.bf16 (!%p228_p9), %v490_v45, %v489_v44  ;;  %v492_v48 = vld [vmem:[%s1552_s4 + $0x18] sm:$0xff] (!%p228_p9)  ;;  %v493_v50 = vld [vmem:[%s1552_s4 + $0x20] sm:$0xff] (!%p228_p9)  ;;  %s1176_s26 = scalar_lea.vmem (!%p228_p9), %s1175_s20, 512 }
  0x14   : > { %v1051_v49 = vpack.c.bf16 (!%p228_p9), %v492_v48, %v491_v46  ;;  %v494_v51 = vld [vmem:[%s1552_s4 + $0x28] sm:$0xff] (!%p228_p9)  ;;  %v495_v53 = vld [vmem:[%s1552_s4 + $0x30] sm:$0xff] (!%p228_p9)  ;;  %v496_v54 = vld [vmem:[%s1552_s4 + $0x38] sm:$0xff] (!%p228_p9) }
  0x15   : > { %s1562_s9 = smov (!%p263_p10, %s760_s9), 3  ;;  %990 = vmatpush3.bf16.msra.mxu1 %v1335_v5  ;;  %1048 = vmatprep.subr.bf16.mxu0 %v1047_v47  ;;  %v1055_v52 = vpack.c.bf16 %v494_v51, %v493_v50  ;;  %v1059_v55 = vpack.c.bf16 %v496_v54, %v495_v53  ;;  %v497_v56 = vld [vmem:[%s1552_s4 + $0x40] sm:$0xff]  ;;  %v498_v57 = vld [vmem:[%s1552_s4 + $0x48] sm:$0xff]  ;;  %v499_v59 = vld [vmem:[%s1552_s4 + $0x50] sm:$0xff] }
  0x16   : > { %s761_s28 = sshll.u32 %s1562_s9, 3  ;;  %992 = vmatprep.subr.bf16.mxu1 %v991_v8  ;;  %1050 = vmatpush3.bf16.msra.mxu0 %v1047_v47  ;;  %v1063_v58 = vpack.c.bf16 %v498_v57, %v497_v56  ;;  %v500_v60 = vld [vmem:[%s1552_s4 + $0x58] sm:$0xff]  ;;  %v501_v62 = vld [vmem:[%s1552_s4 + $0x60] sm:$0xff]  ;;  %v502_v63 = vld [vmem:[%s1552_s4 + $0x68] sm:$0xff]  ;;  %s1507_s9 = scalar_lea.sflag [#allocation3], %s259_s29 }
  0x17   : > { %s266_s11 = scalar_lea.vmem %s1548_s0, %s761_s28  ;;  %s272_s14 = scalar_lea.vmem %s1549_s1, %s761_s28  ;;  %1052 = vmatprep.subr.bf16.mxu0 %v1051_v49  ;;  %v1067_v61 = vpack.c.bf16 %v500_v60, %v499_v59  ;;  %v503_v0 = vld [vmem:[%s1552_s4 + $0x70] sm:$0xff]  ;;  %v1071_v1 = vpack.c.bf16 %v502_v63, %v501_v62  ;;  %v504_v2 = vld [vmem:[%s1552_s4 + $0x78] sm:$0xff]  ;;  %v473_v4 = vld [vmem:[%s1551_s3] sm:$0xff] }
  0x18   : > { %v275_v10 = vld [vmem:[%s266_s11] sm:$0xff]  ;;  %v276_v13 = vld [vmem:[%s266_s11 + $0x8] sm:$0xff]  ;;  %v479_v23 = vld [vmem:[%s1551_s3 + $0x30] sm:$0xff] }
  0x19   : > { %v277_v11 = vld [vmem:[%s272_s14] sm:$0xff]  ;;  %295 = vmax.xlane.f32.xlu0 %v275_v10  ;;  %v278_v14 = vld [vmem:[%s272_s14 + $0x8] sm:$0xff]  ;;  %994 = vmatpush3.bf16.msra.mxu1 %v991_v8  ;;  %s681_s14 = sshll.u32 %s261_s13, 4  ;;  %s1500_s14 = int_to_ptr.vmem [resolvable:$true] %s681_s14 }
  0x1a   : > { %305 = vmax.xlane.f32.xlu1 %v277_v11  ;;  %996 = vmatprep.subr.bf16.mxu1 %v995_v15  ;;  %v477_v20 = vld [vmem:[%s1551_s3 + $0x20] sm:$0xff]  ;;  %s1170_s25 = scalar_lea.vmem %s1500_s14, 256  ;;  %p1177_p0 = scmp.lt.s32.totalorder %s1500_s14, %s1175_s20 }
  0x1b   : > { %1054 = vmatpush3.bf16.msra.mxu0 %v1051_v49  ;;  %v481_v26 = vld [vmem:[%s1551_s3 + $0x40] sm:$0xff]  ;;  %p1171_p11 = scmp.ne.s32.totalorder %s1500_s14, %s1170_s25  ;;  %p1178_p1 = scmp.lt.s32.totalorder %s1176_s26, %s1170_s25 }
  0x1c   : > { %1056 = vmatprep.subr.bf16.mxu0 %v1055_v52 }
  0x1d   : > { %297 = vmax.xlane.f32.xlu0 %v276_v13  ;;  %998 = vmatpush3.bf16.msra.mxu1 %v995_v15  ;;  %p1172_p12 = pnand %p1171_p11, %p1310_p5  ;;  %p1179_p2 = por %p1178_p1, %p1177_p0 }
  0x1e   : > { %307 = vmax.xlane.f32.xlu1 %v278_v14  ;;  %1000 = vmatprep.subr.bf16.mxu1 %v999_v18 }
  0x1f   : > { %1058 = vmatpush3.bf16.msra.mxu0 %v1055_v52  ;;  %p1173_p13 = pneg %p1172_p12 }
  0x20   : > { %1060 = vmatprep.subr.bf16.mxu0 %v1059_v55 }
  0x21   : > { %1002 = vmatpush3.bf16.msra.mxu1 %v999_v18  ;;  %p1180_p3 = pnand %p1179_p2, %p1173_p13 }
  0x22   : > { %1004 = vmatprep.subr.bf16.mxu1 %v1003_v21 }
  0x23   : > { %1062 = vmatpush3.bf16.msra.mxu0 %v1059_v55 }
  0x24   : > { %1064 = vmatprep.subr.bf16.mxu0 %v1063_v58 }
  0x25   : > { %1006 = vmatpush3.bf16.msra.mxu1 %v1003_v21 }
  0x26   : > { %1008 = vmatprep.subr.bf16.mxu1 %v1007_v24 }
  0x27   : > { %1066 = vmatpush3.bf16.msra.mxu0 %v1063_v58 }
  0x28   : > { %1068 = vmatprep.subr.bf16.mxu0 %v1067_v61 }
  0x29   : > { %1010 = vmatpush3.bf16.msra.mxu1 %v1007_v24 }
  0x2a   : > { %1012 = vmatprep.subr.bf16.mxu1 %v1011_v27 }
  0x2b   : > { %1070 = vmatpush3.bf16.msra.mxu0 %v1067_v61 }
  0x2c   : > { %1072 = vmatprep.subr.bf16.mxu0 %v1071_v1 }
  0x2d   : > { %1014 = vmatpush3.bf16.msra.mxu1 %v1011_v27 }
  0x2e   : > { %1016 = vmatprep.subr.bf16.mxu1 %v1330_v3 }
  0x2f   : > { %1074 = vmatpush3.bf16.msra.mxu0 %v1071_v1 }
  0xa6   : > { %v296_v28 = vpop.xlane.xlu0 %295 }
  0xa7   : > { %v306_v29 = vpop.xlane.xlu1 %305  ;;  %v299_v30 = vsub.f32 %v275_v10, %v296_v28 }
  0xa8   : > { %v309_v31 = vsub.f32 %v277_v11, %v306_v29  ;;  %v483_v29 = vld [vmem:[%s1551_s3 + $0x50] sm:$0xff] }
  0xa9   : > { %v301_v32 = vmul.f32 1.442695, %v299_v30  ;;  %v484_v30 = vld [vmem:[%s1551_s3 + $0x58] sm:$0xff] }
  0xaa   : > { %v298_v33 = vpop.xlane.xlu0 %297  ;;  %v311_v34 = vmul.f32 1.442695, %v309_v31  ;;  %v1099_v31 = vpack.c.bf16 %v484_v30, %v483_v29 }
  0xab   : > { %1154 = vpow2.f32 %v301_v32  ;;  %v300_v35 = vsub.f32 %v276_v13, %v298_v33  ;;  %v308_v40 = vpop.xlane.xlu1 %307  ;;  %v475_v13 = vld [vmem:[%s1551_s3 + $0x10] sm:$0xff]  ;;  %v485_v32 = vld [vmem:[%s1551_s3 + $0x60] sm:$0xff]  ;;  %v486_v33 = vld [vmem:[%s1551_s3 + $0x68] sm:$0xff] }
  0xac   : > { %1156 = vpow2.f32 %v311_v34  ;;  %v310_v41 = vsub.f32 %v278_v14, %v308_v40  ;;  %v476_v14 = vld [vmem:[%s1551_s3 + $0x18] sm:$0xff]  ;;  %v1103_v34 = vpack.c.bf16 %v486_v33, %v485_v32 }
  0xad   : > { %v303_v36 = vmul.f32 1.442695, %v300_v35  ;;  %v487_v35 = vld [vmem:[%s1551_s3 + $0x70] sm:$0xff] }
  0xae   : > { %v313_v42 = vmul.f32 1.442695, %v310_v41  ;;  %v764_v41 = vld [vmem:[%s1553_s5] ss:$0 sm:$0xff] }
  0xaf   : > { %1158 = vpow2.f32 %v303_v36  ;;  %v488_v36 = vld [vmem:[%s1551_s3 + $0x78] sm:$0xff] }
  0xb0   : > { %1160 = vpow2.f32 %v313_v42 }
  0xb5   : > { %v1384_v37 = vpop.eup %1154 }
  0xb6   : > { %875 = vmatprep.mubr.f32.mxu1 %v1384_v37  ;;  %v1387_v38 = vpop.eup %1156 }
  0xb9   : > { %v1389_v39 = vpop.eup %1158 }
  0xba   : > { %876 = vmatmul.mubr.f32.vlgmr.msra.gmra.mrb[0].mxu1 %v1389_v39  ;;  %v1161_v43 = vpop.eup %1160 }
  0xbb   : > { %1018 = vmatpush3.bf16.msra.mxu1 %v1330_v3  ;;  %910 = vmatprep.mubr.f32.mxu1 %v1387_v38  ;;  %v1075_v3 = vpack.c.bf16 %v504_v2, %v503_v0 }
  0xbc   : > { %1020 = vmatprep.subr.bf16.mxu1 %v1335_v5 }
  0xbd   : > { %1076 = vmatprep.subr.bf16.mxu0 %v1075_v3 }
  0xbe   : > { %1078 = vmatpush3.bf16.msra.mxu0 %v1075_v3 }
  0xbf   : > { %1022 = vmatpush3.bf16.msra.mxu1 %v1335_v5  ;;  %v474_v5 = vld [vmem:[%s1551_s3 + $0x8] sm:$0xff] }
  0xc0   : > { %1024 = vmatprep.subr.bf16.mxu1 %v991_v8  ;;  %v1079_v6 = vpack.c.bf16 %v474_v5, %v473_v4 }
  0xc2   : > { %1080 = vmatprep.subr.bf16.mxu0 %v1079_v6 }
  0xc3   : > { %1026 = vmatpush3.bf16.msra.mxu1 %v991_v8 }
  0xc4   : > { %1028 = vmatprep.subr.bf16.mxu1 %v995_v15 }
  0xc7   : > { %1030 = vmatpush3.bf16.msra.mxu1 %v995_v15 }
  0xc8   : > { %1032 = vmatprep.subr.bf16.mxu1 %v999_v18 }
  0xcb   : > { %1034 = vmatpush3.bf16.msra.mxu1 %v999_v18  ;;  %v1083_v18 = vpack.c.bf16 %v476_v14, %v475_v13 }
  0xcc   : > { %1036 = vmatprep.subr.bf16.mxu1 %v1003_v21 }
  0xcf   : > { %1038 = vmatpush3.bf16.msra.mxu1 %v1003_v21  ;;  %v478_v21 = vld [vmem:[%s1551_s3 + $0x28] sm:$0xff] }
  0xd0   : > { %1040 = vmatprep.subr.bf16.mxu1 %v1007_v24  ;;  %v1087_v22 = vpack.c.bf16 %v478_v21, %v477_v20 }
  0xd3   : > { %1042 = vmatpush3.bf16.msra.mxu1 %v1007_v24  ;;  %v480_v24 = vld [vmem:[%s1551_s3 + $0x38] sm:$0xff] }
  0xd4   : > { %1044 = vmatprep.subr.bf16.mxu1 %v1011_v27  ;;  %v1091_v25 = vpack.c.bf16 %v480_v24, %v479_v23 }
  0xd7   : > { %1046 = vmatpush3.bf16.msra.mxu1 %v1011_v27  ;;  %v482_v27 = vld [vmem:[%s1551_s3 + $0x48] sm:$0xff] }
  0xd8   : > { %v1095_v28 = vpack.c.bf16 %v482_v27, %v481_v26 }
  0xda   : > { %911 = vmatmul.mubr.f32.vlgmr.msra.gmra.mrb[2].mxu1 %v1161_v43 }
 0x18d   : > { %v877_v7 = vpop.f32.mrb[0].mxu1 }
 0x18e   : > { %v381_v8 = vpop.f32.mrb[1].mxu1 }
 0x18f   : > { %1162 = vrcp.f32 %v381_v8 }
 0x199   : > { %v1163_v11 = vpop.eup %1162 }
 0x19a   : > { %v466_v19 = vmul.f32 %v1163_v11, %v1384_v37  ;;  %v1107_v37 = vpack.c.bf16 %v488_v36, %v487_v35 }
 0x1ad   : > { %v912_v9 = vpop.f32.mrb[2].mxu1 }
 0x1ae   : > { %1164 = vrcp.f32 %v912_v9  ;;  %v456_v10 = vpop.f32.mrb[3].mxu1 }
 0x1af   : > { %1166 = vrcp.f32 %v456_v10 }
 0x1b0   : > { %1168 = vrcp.f32 %v877_v7 }
 0x1b8   : > { %v1165_v12 = vpop.eup %1164 }
 0x1b9   : > { %v1167_v15 = vpop.eup %1166  ;;  %v472_v17 = vmul.f32 %v1165_v12, %v1161_v43 }
 0x1ba   : > { %v470_v16 = vmul.f32 %v1167_v15, %v1387_v38  ;;  %v1169_v38 = vpop.eup %1168 }
 0x1bb   : > { %v468_v40 = vmul.f32 %v1169_v38, %v1389_v39 }
 0x1bc   : > { %945 = vmatprep.mubr.f32.mxu0 %v470_v16 }
 0x1bd   : > { %946 = vmatmul.mubr.f32.vlgmr.msra.gmra.mrb[0].mxu0 %v472_v17 }
 0x1be   : > { %1082 = vmatpush3.bf16.msra.mxu0 %v1079_v6  ;;  %980 = vmatprep.mubr.f32.mxu0 %v466_v19 }
 0x1bf   : > { %1084 = vmatprep.subr.bf16.mxu0 %v1083_v18 }
 0x1c2   : > { %1086 = vmatpush3.bf16.msra.mxu0 %v1083_v18 }
 0x1c3   : > { %1088 = vmatprep.subr.bf16.mxu0 %v1087_v22 }
 0x1c6   : > { %1090 = vmatpush3.bf16.msra.mxu0 %v1087_v22 }
 0x1c7   : > { %1092 = vmatprep.subr.bf16.mxu0 %v1091_v25 }
 0x1ca   : > { %1094 = vmatpush3.bf16.msra.mxu0 %v1091_v25 }
 0x1cb   : > { %1096 = vmatprep.subr.bf16.mxu0 %v1095_v28 }
 0x1ce   : > { %1098 = vmatpush3.bf16.msra.mxu0 %v1095_v28 }
 0x1cf   : > { %1100 = vmatprep.subr.bf16.mxu0 %v1099_v31 }
 0x1d2   : > { %1102 = vmatpush3.bf16.msra.mxu0 %v1099_v31 }
 0x1d3   : > { %1104 = vmatprep.subr.bf16.mxu0 %v1103_v34 }
 0x1d6   : > { %1106 = vmatpush3.bf16.msra.mxu0 %v1103_v34 }
 0x1d7   : > { %1108 = vmatprep.subr.bf16.mxu0 %v1107_v37 }
 0x1da   : > { %1110 = vmatpush3.bf16.msra.mxu0 %v1107_v37 }
 0x1dd   : > { %981 = vmatmul.mubr.f32.vlgmr.msra.gmra.mrb[0].mxu0 %v468_v40 }
 0x2b0   : > { %v982_v42 = vpop.f32.mrb[0].mxu0 }
 0x2b1   : > { %v663_v43 = vadd.f32 %v982_v42, %v764_v41  ;;  %v646_v39 = vpop.f32.mrb[1].mxu0 }
 0x2b2   : > { %v662_v44 = vadd.f32 %v764_v41, %v646_v39 }
 0x2b3   : > { %666 = vst.msk [vmem:[%s261_s13 + $0x8] sm:$0xff] %vm664_vm0, %v663_v43 }
 0x2b4   : > { %665 = vst.msk [vmem:[%s261_s13] sm:$0xff] %vm664_vm0, %v662_v44 }
 0x2b5   : > { %1183 = shalt.err (!%p1180_p3)
}
 0x2b6   : > { %s1184_s28 = scalar_lea.hbm %s1505_s18, 256  ;;  %s1188_s11 = scalar_lea.hbm %s1554_s6, 512 }
 0x2b7   : > { %p1185_p4 = scmp.ne.s32.totalorder %s1505_s18, %s1184_s28  ;;  %p1189_p9 = scmp.lt.u32.totalorder %s1505_s18, %s1554_s6 }
 0x2b8   : > { %p1190_p10 = scmp.lt.u32.totalorder %s1188_s11, %s1184_s28  ;;  %p1192_p12 = scmp.lt.u32.totalorder %s1184_s28, %s1505_s18 }
 0x2b9   : > { %p1186_p7 = pnand %p1185_p4, %p1310_p5 }
 0x2ba   : > { %p1191_p11 = por %p1190_p10, %p1189_p9 }
 0x2bb   : > { %p1187_p8 = pneg %p1186_p7 }
 0x2bc   : > { %p1193_p13 = por %p1192_p12, %p1191_p11 }
 0x2be   : > { %p1194_p0 = pnand %p1193_p13, %p1187_p8 }
 0x2c0   : > { %1197 = shalt.err (!%p1194_p0)
}
 0x2c1   : > { %s1235_s15 = smov 128   ;;  %s1236_s16 = smov 8  }
 0x2c2   : > { %1113 = dma.vmem_to_hbm [thread:$0]  (%p1310_p5), %s1500_s14, 256, %s1505_s18, %s1507_s9, %s1235_s15, %s1235_s15, %s1236_s16  }
 0x2c3 PF: > { %p1119_p1 = scmp.ge.s32.totalorder %s1232_s24, 2  ;;  %s696_s17 = sand.u32 1, %s1220_s21  }
 0x2c4   : > { %s697_s25 = scalar_lea.sflag [#allocation3], %s696_s17 }
 0x2c5   : > { %p1116_p2 = pnand %p1119_p1, %p1314_p6 }
 0x2c7   : > { %1215 = dma.done.wait (!%p1116_p2), %s697_s25, 256  }
 0x2c8   : > { %1217 = vsyncadd (!%p1116_p2), %s697_s25, 4294967040  ;;  %p16_p3 = scmp.ge.s32.totalorder %s1297_s27, 4   ;;  %s1557_s21 = smov %s1224_s22 }
 0x2c9   : > { %s1558_s22 = smov %s1228_s23  ;;  %s1559_s23 = smov %s1308_s30 }
 0x2ca   : > { %s1560_s24 = smov %s1297_s27  ;;  %18 = sbr.rel (!%p16_p3) target bundleno = 3 (0x3), region = 82 }
 0x2d1   :  { %702 = vsyncpa [#allocation3], 1 }
 0x2d2   :  { %704 = vsyncpa [#allocation3 + $0x1], 1 }

</bundles_post_ra>
